<compile_context>
chip_gen: v7x
topology: tpu7x:2x2x1
jax: 0.10.0
libtpu: 0.0.40
codegen_flags: <defaults>
</compile_context>

<pallas_src>
import math
import functools

import jax
import jax.numpy as jnp
from jax import lax
from jax.experimental import pallas as pl
from jax.experimental.pallas import tpu as pltpu


def attention_kernel(x_ref, wq_ref, bq_ref, wk_ref, bk_ref, wv_ref, bv_ref,
                     wo_ref, bo_ref, out_ref, probs_ref, acc_ref,
                     *, scale, compute_dtype):
    """One grid step = (batch element b, attention head h).

    x_ref:       (1, S, H)     input hidden states (f32)
    wq/wk/wv:    (1, H, d)     per-head projection weight slice (compute_dtype)
    bq/bk/bv:    (1, 1, d)     per-head projection bias slice (f32)
    wo_ref:      (1, d, H)     per-head slice of output projection (compute_dtype)
    bo_ref:      (1, H)        output projection bias (f32)
    out_ref:     (1, S, H)     output (revisited across h -> accumulator)
    probs_ref:   (1, 1, S, S)  softmax attention weights for this (b, h)
    acc_ref:     (S, H) f32    VMEM scratch accumulating the output projection
    """
    h = pl.program_id(1)
    last_h = pl.num_programs(1) - 1

    @pl.when(h == 0)
    def _():
        acc_ref[...] = jnp.zeros_like(acc_ref)

    x = x_ref[0].astype(compute_dtype)                       # (S, H)

    # Per-head Q/K/V projections: full-H contraction on the MXU, f32 accumulate.
    q = jnp.dot(x, wq_ref[0], preferred_element_type=jnp.float32) + bq_ref[0]
    k = jnp.dot(x, wk_ref[0], preferred_element_type=jnp.float32) + bk_ref[0]
    v = jnp.dot(x, wv_ref[0], preferred_element_type=jnp.float32) + bv_ref[0]

    # scores = q @ k^T without materializing a transpose: contract last axes.
    scores = lax.dot_general(
        q.astype(compute_dtype), k.astype(compute_dtype),
        dimension_numbers=(((1,), (1,)), ((), ())),
        preferred_element_type=jnp.float32) * scale           # (S, S) f32

    # Numerically stable softmax, exact f32 throughout.
    m = jnp.max(scores, axis=-1, keepdims=True)
    e = jnp.exp(scores - m)
    denom = jnp.sum(e, axis=-1, keepdims=True)
    probs = e / denom                                         # (S, S) f32

    probs_ref[0, 0] = probs.astype(probs_ref.dtype)

    # Context for this head, then its contribution to the output projection.
    ctx = jnp.dot(probs.astype(compute_dtype), v.astype(compute_dtype),
                  preferred_element_type=jnp.float32)         # (S, d) f32
    acc_ref[...] += jnp.dot(ctx.astype(compute_dtype), wo_ref[0],
                            preferred_element_type=jnp.float32)  # (S, H) f32

    @pl.when(h == last_h)
    def _():
        out_ref[0] = (acc_ref[...] + bo_ref[...]).astype(out_ref.dtype)


def attention_forward(hidden_states, params, *, num_heads,
                      compute_dtype=jnp.float32):
    """hidden_states: (B, S, H) f32. params: dict of (H,H) weights / (H,) biases."""
    B, S, H = hidden_states.shape
    assert H % num_heads == 0
    d = H // num_heads
    f32 = jnp.float32

    # Per-head weight layouts so BlockSpecs deliver exactly one head's slice per
    # grid step. MXU operands optionally cast to bf16 once, here (halves DMA).
    wq = params["wq"].reshape(H, num_heads, d).transpose(1, 0, 2).astype(compute_dtype)
    wk = params["wk"].reshape(H, num_heads, d).transpose(1, 0, 2).astype(compute_dtype)
    wv = params["wv"].reshape(H, num_heads, d).transpose(1, 0, 2).astype(compute_dtype)
    wo = params["wo"].reshape(num_heads, d, H).astype(compute_dtype)
    bq = params["bq"].reshape(num_heads, 1, d).astype(f32)
    bk = params["bk"].reshape(num_heads, 1, d).astype(f32)
    bv = params["bv"].reshape(num_heads, 1, d).astype(f32)
    bo = params["bo"].reshape(1, H).astype(f32)

    kernel = functools.partial(attention_kernel,
                               scale=1.0 / math.sqrt(d),
                               compute_dtype=compute_dtype)

    batch_map = lambda b, h: (b, 0, 0)
    head_map = lambda b, h: (h, 0, 0)

    in_specs = [
        pl.BlockSpec((1, S, H), batch_map),             # x (revisited across h)
        pl.BlockSpec((1, H, d), head_map),              # wq[h]
        pl.BlockSpec((1, 1, d), head_map),              # bq[h]
        pl.BlockSpec((1, H, d), head_map),              # wk[h]
        pl.BlockSpec((1, 1, d), head_map),              # bk[h]
        pl.BlockSpec((1, H, d), head_map),              # wv[h]
        pl.BlockSpec((1, 1, d), head_map),              # bv[h]
        pl.BlockSpec((1, d, H), head_map),              # wo[h]
        pl.BlockSpec((1, H), lambda b, h: (0, 0)),      # bo (constant)
    ]
    out_specs = [
        pl.BlockSpec((1, S, H), batch_map),                     # out (acc over h)
        pl.BlockSpec((1, 1, S, S), lambda b, h: (b, h, 0, 0)),  # probs per (b, h)
    ]
    out_shape = (
        jax.ShapeDtypeStruct((B, S, H), hidden_states.dtype),
        jax.ShapeDtypeStruct((B, num_heads, S, S), jnp.float32),
    )

    # Explicit VMEM budget from the per-step tile footprint: double-buffered
    # pipeline blocks + f32 accumulator scratch + headroom for temporaries.
    # Capped at 64 MiB so the request is valid on v7x (64 MiB physical VMEM).
    def nbytes(shape, dtype):
        return math.prod(shape) * jnp.dtype(dtype).itemsize

    per_step = (nbytes((S, H), hidden_states.dtype)
                + 3 * nbytes((H, d), compute_dtype)
                + 3 * nbytes((1, d), f32)
                + nbytes((d, H), compute_dtype)
                + nbytes((1, H), f32)
                + nbytes((S, H), hidden_states.dtype)   # out block
                + nbytes((S, S), f32))                  # probs block
    temporaries = 4 * nbytes((S, S), f32) + 8 * nbytes((S, max(H, d)), f32)
    vmem_limit = int(min(64 * 2**20,
                         max(32 * 2**20,
                             2 * per_step + nbytes((S, H), f32) + temporaries)))

    return pl.pallas_call(
        kernel,
        out_shape=out_shape,
        grid_spec=pltpu.PrefetchScalarGridSpec(
            num_scalar_prefetch=0,
            grid=(B, num_heads),        # reduction (head) axis last
            in_specs=in_specs,
            out_specs=out_specs,
            scratch_shapes=[pltpu.VMEM((S, H), jnp.float32)],
        ),
        compiler_params=pltpu.CompilerParams(
            dimension_semantics=("parallel", "arbitrary"),
            vmem_limit_bytes=vmem_limit,
        ),
    )(hidden_states, wq, bq, wk, bk, wv, bv, wo, bo)


def reference_attention(x, params, *, num_heads):
    """Pure-JAX reference matching the PyTorch forward."""
    B, S, H = x.shape
    d = H // num_heads
    q = x @ params["wq"] + params["bq"]
    k = x @ params["wk"] + params["bk"]
    v = x @ params["wv"] + params["bv"]

    def split(t):
        return t.reshape(B, S, num_heads, d).transpose(0, 2, 1, 3)  # (B, nH, S, d)

    qh, kh, vh = split(q), split(k), split(v)
    scores = jnp.einsum("bhqd,bhkd->bhqk", qh, kh) / math.sqrt(d)
    probs = jax.nn.softmax(scores, axis=-1)
    ctx = jnp.einsum("bhqk,bhkd->bhqd", probs, vh)
    ctx = ctx.transpose(0, 2, 1, 3).reshape(B, S, H)
    out = ctx @ params["wo"] + params["bo"]
    return out, probs


if __name__ == "__main__":
    B, S, H = 2, 8, 32
    num_heads = 4

    key = jax.random.PRNGKey(0)
    keys = jax.random.split(key, 9)

    scale = 1.0 / math.sqrt(H)
    params = {
        "wq": jax.random.normal(keys[0], (H, H), jnp.float32) * scale,
        "bq": jax.random.normal(keys[1], (H,), jnp.float32) * 0.01,
        "wk": jax.random.normal(keys[2], (H, H), jnp.float32) * scale,
        "bk": jax.random.normal(keys[3], (H,), jnp.float32) * 0.01,
        "wv": jax.random.normal(keys[4], (H, H), jnp.float32) * scale,
        "bv": jax.random.normal(keys[5], (H,), jnp.float32) * 0.01,
        "wo": jax.random.normal(keys[6], (H, H), jnp.float32) * scale,
        "bo": jax.random.normal(keys[7], (H,), jnp.float32) * 0.01,
    }
    x = jax.random.normal(keys[8], (B, S, H), jnp.float32)

    ref_out, ref_w = reference_attention(x, params, num_heads=num_heads)

    # Full-precision path (f32 MXU operands, exact softmax).
    out, weights = attention_forward(x, params, num_heads=num_heads,
                                     compute_dtype=jnp.float32)
    out = jax.block_until_ready(out)
    weights = jax.block_until_ready(weights)
    assert out.shape == (B, S, H)
    assert weights.shape == (B, num_heads, S, S)
    assert jnp.allclose(out, ref_out, atol=2e-3, rtol=2e-3)
    assert jnp.allclose(weights, ref_w, atol=2e-3, rtol=2e-3)

    # bf16-operand fast path (v6e/v7x MXU feed); f32 accumulation + f32 softmax.
    out_bf, w_bf = attention_forward(x, params, num_heads=num_heads,
                                     compute_dtype=jnp.bfloat16)
    out_bf = jax.block_until_ready(out_bf)
    w_bf = jax.block_until_ready(w_bf)
    assert jnp.allclose(out_bf, ref_out, atol=1e-1, rtol=1e-1)
    assert jnp.allclose(w_bf, ref_w, atol=1e-1, rtol=1e-1)

    print("KERNEL_OK")
</pallas_src>

<mosaic_0001>
module attributes {stable_mosaic.version = 11 : i64} {
  func.func @attention_kernel(%arg0: i32, %arg1: i32, %arg2: memref<1x8x32xf32, #tpu.memory_space<vmem>>, %arg3: memref<1x32x8xf32, #tpu.memory_space<vmem>>, %arg4: memref<1x1x8xf32, #tpu.memory_space<vmem>>, %arg5: memref<1x32x8xf32, #tpu.memory_space<vmem>>, %arg6: memref<1x1x8xf32, #tpu.memory_space<vmem>>, %arg7: memref<1x32x8xf32, #tpu.memory_space<vmem>>, %arg8: memref<1x1x8xf32, #tpu.memory_space<vmem>>, %arg9: memref<1x8x32xf32, #tpu.memory_space<vmem>>, %arg10: memref<1x32xf32, #tpu.memory_space<vmem>>, %arg11: memref<1x8x32xf32, #tpu.memory_space<vmem>>, %arg12: memref<1x1x8x8xf32, #tpu.memory_space<vmem>>, %arg13: memref<8x32xf32, #tpu.memory_space<vmem>>) attributes {dimension_semantics = [#tpu.dimension_semantics<parallel>, #tpu.dimension_semantics<arbitrary>], iteration_bounds = array<i64: 2, 4>, scalar_prefetch = 0 : i64, scratch_operands = 1 : i64, tpu.core_type = #tpu.core_type<tc>, window_params = [{transform_indices = @transform_0, window_bounds = array<i64: 1, 8, 32>}, {transform_indices = @transform_1, window_bounds = array<i64: 1, 32, 8>}, {transform_indices = @transform_2, window_bounds = array<i64: 1, 1, 8>}, {transform_indices = @transform_3, window_bounds = array<i64: 1, 32, 8>}, {transform_indices = @transform_4, window_bounds = array<i64: 1, 1, 8>}, {transform_indices = @transform_5, window_bounds = array<i64: 1, 32, 8>}, {transform_indices = @transform_6, window_bounds = array<i64: 1, 1, 8>}, {transform_indices = @transform_7, window_bounds = array<i64: 1, 8, 32>}, {pipeline_mode = #tpu.pipeline_mode<synchronous>, transform_indices = @transform_8, window_bounds = array<i64: 1, 32>}, {transform_indices = @transform_9, window_bounds = array<i64: 1, 8, 32>}, {transform_indices = @transform_10, window_bounds = array<i64: 1, 1, 8, 8>}]} {
    %c0_i32 = arith.constant 0 : i32
    %0 = arith.cmpi eq, %arg1, %c0_i32 : i32
    %1 = arith.extui %0 : i1 to i32
    %c0_i32_0 = arith.constant 0 : i32
    %2 = arith.cmpi ne, %1, %c0_i32_0 : i32
    scf.if %2 {
      %cst_41 = arith.constant 0.000000e+00 : f32
      %51 = vector.broadcast %cst_41 : f32 to vector<8x32xf32>
      %c0_42 = arith.constant 0 : index
      %c0_43 = arith.constant 0 : index
      %52 = vector.load %arg13[%c0_42, %c0_43] : memref<8x32xf32, #tpu.memory_space<vmem>>, vector<8x32xf32>
      tpu.vector_store %arg13[%c0_42, %c0_43], %51 {strides = array<i32>} : memref<8x32xf32, #tpu.memory_space<vmem>>, vector<8x32xf32>,
    } else {
    }
    %c0 = arith.constant 0 : index
    %c0_1 = arith.constant 0 : index
    %c0_2 = arith.constant 0 : index
    %3 = vector.load %arg2[%c0, %c0_1, %c0_2] : memref<1x8x32xf32, #tpu.memory_space<vmem>>, vector<1x8x32xf32>
    %4 = vector.shape_cast %3 : vector<1x8x32xf32> to vector<8x32xf32>
    %c0_3 = arith.constant 0 : index
    %c0_4 = arith.constant 0 : index
    %c0_5 = arith.constant 0 : index
    %5 = vector.load %arg3[%c0_3, %c0_4, %c0_5] : memref<1x32x8xf32, #tpu.memory_space<vmem>>, vector<1x32x8xf32>
    %6 = vector.shape_cast %5 : vector<1x32x8xf32> to vector<32x8xf32>
    %cst = arith.constant dense<0.000000e+00> : vector<8x8xf32>
    %7 = tpu.matmul %4, %6, %cst {dimension_numbers = #tpu.dot_dimension_numbers<[1], [0], [0], [1], [0, 0, 1, 1], [], []>} : vector<8x32xf32>, vector<32x8xf32>, vector<8x8xf32> -> vector<8x8xf32>
    %c0_6 = arith.constant 0 : index
    %c0_7 = arith.constant 0 : index
    %c0_8 = arith.constant 0 : index
    %8 = vector.load %arg4[%c0_6, %c0_7, %c0_8] : memref<1x1x8xf32, #tpu.memory_space<vmem>>, vector<1x1x8xf32>
    %9 = vector.shape_cast %8 : vector<1x1x8xf32> to vector<1x8xf32>
    %10 = vector.broadcast %9 : vector<1x8xf32> to vector<8x8xf32>
    %11 = arith.addf %7, %10 : vector<8x8xf32>
    %c0_9 = arith.constant 0 : index
    %c0_10 = arith.constant 0 : index
    %c0_11 = arith.constant 0 : index
    %12 = vector.load %arg5[%c0_9, %c0_10, %c0_11] : memref<1x32x8xf32, #tpu.memory_space<vmem>>, vector<1x32x8xf32>
    %13 = vector.shape_cast %12 : vector<1x32x8xf32> to vector<32x8xf32>
    %cst_12 = arith.constant dense<0.000000e+00> : vector<8x8xf32>
    %14 = tpu.matmul %4, %13, %cst_12 {dimension_numbers = #tpu.dot_dimension_numbers<[1], [0], [0], [1], [0, 0, 1, 1], [], []>} : vector<8x32xf32>, vector<32x8xf32>, vector<8x8xf32> -> vector<8x8xf32>
    %c0_13 = arith.constant 0 : index
    %c0_14 = arith.constant 0 : index
    %c0_15 = arith.constant 0 : index
    %15 = vector.load %arg6[%c0_13, %c0_14, %c0_15] : memref<1x1x8xf32, #tpu.memory_space<vmem>>, vector<1x1x8xf32>
    %16 = vector.shape_cast %15 : vector<1x1x8xf32> to vector<1x8xf32>
    %17 = vector.broadcast %16 : vector<1x8xf32> to vector<8x8xf32>
    %18 = arith.addf %14, %17 : vector<8x8xf32>
    %c0_16 = arith.constant 0 : index
    %c0_17 = arith.constant 0 : index
    %c0_18 = arith.constant 0 : index
    %19 = vector.load %arg7[%c0_16, %c0_17, %c0_18] : memref<1x32x8xf32, #tpu.memory_space<vmem>>, vector<1x32x8xf32>
    %20 = vector.shape_cast %19 : vector<1x32x8xf32> to vector<32x8xf32>
    %cst_19 = arith.constant dense<0.000000e+00> : vector<8x8xf32>
    %21 = tpu.matmul %4, %20, %cst_19 {dimension_numbers = #tpu.dot_dimension_numbers<[1], [0], [0], [1], [0, 0, 1, 1], [], []>} : vector<8x32xf32>, vector<32x8xf32>, vector<8x8xf32> -> vector<8x8xf32>
    %c0_20 = arith.constant 0 : index
    %c0_21 = arith.constant 0 : index
    %c0_22 = arith.constant 0 : index
    %22 = vector.load %arg8[%c0_20, %c0_21, %c0_22] : memref<1x1x8xf32, #tpu.memory_space<vmem>>, vector<1x1x8xf32>
    %23 = vector.shape_cast %22 : vector<1x1x8xf32> to vector<1x8xf32>
    %24 = vector.broadcast %23 : vector<1x8xf32> to vector<8x8xf32>
    %25 = arith.addf %21, %24 : vector<8x8xf32>
    %cst_23 = arith.constant dense<0.000000e+00> : vector<8x8xf32>
    %26 = tpu.matmul %11, %18, %cst_23 {dimension_numbers = #tpu.dot_dimension_numbers<[1], [1], [0], [0], [0, 0, 1, 0], [], []>} : vector<8x8xf32>, vector<8x8xf32>, vector<8x8xf32> -> vector<8x8xf32>
    %cst_24 = arith.constant 0.353553385 : f32
    %27 = vector.broadcast %cst_24 : f32 to vector<8x8xf32>
    %28 = arith.mulf %26, %27 : vector<8x8xf32>
    %cst_25 = arith.constant dense<0xFF800000> : vector<8xf32>
    %29 = vector.multi_reduction <maximumf>, %28, %cst_25 [1] : vector<8x8xf32> to vector<8xf32>
    %30 = vector.shape_cast %29 : vector<8xf32> to vector<8x1xf32>
    %31 = vector.broadcast %30 : vector<8x1xf32> to vector<8x8xf32>
    %32 = arith.subf %28, %31 : vector<8x8xf32>
    %33 = math.exp %32 : vector<8x8xf32>
    %cst_26 = arith.constant dense<0.000000e+00> : vector<8xf32>
    %34 = vector.multi_reduction <add>, %33, %cst_26 [1] : vector<8x8xf32> to vector<8xf32>
    %35 = vector.shape_cast %34 : vector<8xf32> to vector<8x1xf32>
    %36 = vector.broadcast %35 : vector<8x1xf32> to vector<8x8xf32>
    %37 = arith.divf %33, %36 : vector<8x8xf32>
    %c0_27 = arith.constant 0 : index
    %c0_28 = arith.constant 0 : index
    %c0_29 = arith.constant 0 : index
    %c0_30 = arith.constant 0 : index
    %38 = vector.load %arg12[%c0_27, %c0_28, %c0_29, %c0_30] : memref<1x1x8x8xf32, #tpu.memory_space<vmem>>, vector<1x1x8x8xf32>
    %39 = vector.shape_cast %38 : vector<1x1x8x8xf32> to vector<8x8xf32>
    %40 = vector.shape_cast %37 : vector<8x8xf32> to vector<1x1x8x8xf32>
    tpu.vector_store %arg12[%c0_27, %c0_28, %c0_29, %c0_30], %40 {strides = array<i32>} : memref<1x1x8x8xf32, #tpu.memory_space<vmem>>, vector<1x1x8x8xf32>,
    %cst_31 = arith.constant dense<0.000000e+00> : vector<8x8xf32>
    %41 = tpu.matmul %37, %25, %cst_31 {dimension_numbers = #tpu.dot_dimension_numbers<[1], [0], [0], [1], [0, 0, 1, 1], [], []>} : vector<8x8xf32>, vector<8x8xf32>, vector<8x8xf32> -> vector<8x8xf32>
    %c0_32 = arith.constant 0 : index
    %c0_33 = arith.constant 0 : index
    %42 = vector.load %arg13[%c0_32, %c0_33] : memref<8x32xf32, #tpu.memory_space<vmem>>, vector<8x32xf32>
    %c0_34 = arith.constant 0 : index
    %c0_35 = arith.constant 0 : index
    %c0_36 = arith.constant 0 : index
    %43 = vector.load %arg9[%c0_34, %c0_35, %c0_36] : memref<1x8x32xf32, #tpu.memory_space<vmem>>, vector<1x8x32xf32>
    %44 = vector.shape_cast %43 : vector<1x8x32xf32> to vector<8x32xf32>
    %cst_37 = arith.constant dense<0.000000e+00> : vector<8x32xf32>
    %45 = tpu.matmul %41, %44, %cst_37 {dimension_numbers = #tpu.dot_dimension_numbers<[1], [0], [0], [1], [0, 0, 1, 1], [], []>} : vector<8x8xf32>, vector<8x32xf32>, vector<8x32xf32> -> vector<8x32xf32>
    %46 = arith.addf %42, %45 : vector<8x32xf32>
    %c0_38 = arith.constant 0 : index
    %c0_39 = arith.constant 0 : index
    %47 = vector.load %arg13[%c0_38, %c0_39] : memref<8x32xf32, #tpu.memory_space<vmem>>, vector<8x32xf32>
    tpu.vector_store %arg13[%c0_38, %c0_39], %46 {strides = array<i32>} : memref<8x32xf32, #tpu.memory_space<vmem>>, vector<8x32xf32>,
    %c3_i32 = arith.constant 3 : i32
    %48 = arith.cmpi eq, %arg1, %c3_i32 : i32
    %49 = arith.extui %48 : i1 to i32
    %c0_i32_40 = arith.constant 0 : i32
    %50 = arith.cmpi ne, %49, %c0_i32_40 : i32
    scf.if %50 {
      %c0_41 = arith.constant 0 : index
      %c0_42 = arith.constant 0 : index
      %51 = vector.load %arg13[%c0_41, %c0_42] : memref<8x32xf32, #tpu.memory_space<vmem>>, vector<8x32xf32>
      %c0_43 = arith.constant 0 : index
      %c0_44 = arith.constant 0 : index
      %52 = vector.load %arg10[%c0_43, %c0_44] : memref<1x32xf32, #tpu.memory_space<vmem>>, vector<1x32xf32>
      %53 = vector.broadcast %52 : vector<1x32xf32> to vector<8x32xf32>
      %54 = arith.addf %51, %53 : vector<8x32xf32>
      %c0_45 = arith.constant 0 : index
      %c0_46 = arith.constant 0 : index
      %c0_47 = arith.constant 0 : index
      %55 = vector.load %arg11[%c0_45, %c0_46, %c0_47] : memref<1x8x32xf32, #tpu.memory_space<vmem>>, vector<1x8x32xf32>
      %56 = vector.shape_cast %55 : vector<1x8x32xf32> to vector<8x32xf32>
      %57 = vector.shape_cast %54 : vector<8x32xf32> to vector<1x8x32xf32>
      tpu.vector_store %arg11[%c0_45, %c0_46, %c0_47], %57 {strides = array<i32>} : memref<1x8x32xf32, #tpu.memory_space<vmem>>, vector<1x8x32xf32>,
    } else {
    }
    return
  }
  func.func @transform_0(%arg0: i32, %arg1: i32) -> (i32, i32, i32) {
    %c0_i32 = arith.constant 0 : i32
    %c0_i32_0 = arith.constant 0 : i32
    %c0_i32_1 = arith.constant 0 : i32
    return %arg0, %c0_i32, %c0_i32_0 : i32, i32, i32
  }
  func.func @transform_1(%arg0: i32, %arg1: i32) -> (i32, i32, i32) {
    %c0_i32 = arith.constant 0 : i32
    %c0_i32_0 = arith.constant 0 : i32
    %c0_i32_1 = arith.constant 0 : i32
    return %arg1, %c0_i32, %c0_i32_0 : i32, i32, i32
  }
  func.func @transform_2(%arg0: i32, %arg1: i32) -> (i32, i32, i32) {
    %c0_i32 = arith.constant 0 : i32
    %c0_i32_0 = arith.constant 0 : i32
    %c0_i32_1 = arith.constant 0 : i32
    return %arg1, %c0_i32, %c0_i32_0 : i32, i32, i32
  }
  func.func @transform_3(%arg0: i32, %arg1: i32) -> (i32, i32, i32) {
    %c0_i32 = arith.constant 0 : i32
    %c0_i32_0 = arith.constant 0 : i32
    %c0_i32_1 = arith.constant 0 : i32
    return %arg1, %c0_i32, %c0_i32_0 : i32, i32, i32
  }
  func.func @transform_4(%arg0: i32, %arg1: i32) -> (i32, i32, i32) {
    %c0_i32 = arith.constant 0 : i32
    %c0_i32_0 = arith.constant 0 : i32
    %c0_i32_1 = arith.constant 0 : i32
    return %arg1, %c0_i32, %c0_i32_0 : i32, i32, i32
  }
  func.func @transform_5(%arg0: i32, %arg1: i32) -> (i32, i32, i32) {
    %c0_i32 = arith.constant 0 : i32
    %c0_i32_0 = arith.constant 0 : i32
    %c0_i32_1 = arith.constant 0 : i32
    return %arg1, %c0_i32, %c0_i32_0 : i32, i32, i32
  }
  func.func @transform_6(%arg0: i32, %arg1: i32) -> (i32, i32, i32) {
    %c0_i32 = arith.constant 0 : i32
    %c0_i32_0 = arith.constant 0 : i32
    %c0_i32_1 = arith.constant 0 : i32
    return %arg1, %c0_i32, %c0_i32_0 : i32, i32, i32
  }
  func.func @transform_7(%arg0: i32, %arg1: i32) -> (i32, i32, i32) {
    %c0_i32 = arith.constant 0 : i32
    %c0_i32_0 = arith.constant 0 : i32
    %c0_i32_1 = arith.constant 0 : i32
    return %arg1, %c0_i32, %c0_i32_0 : i32, i32, i32
  }
  func.func @transform_8(%arg0: i32, %arg1: i32) -> (i32, i32) {
    %c0_i32 = arith.constant 0 : i32
    %c0_i32_0 = arith.constant 0 : i32
    %c0_i32_1 = arith.constant 0 : i32
    return %c0_i32, %c0_i32_0 : i32, i32
  }
  func.func @transform_9(%arg0: i32, %arg1: i32) -> (i32, i32, i32) {
    %c0_i32 = arith.constant 0 : i32
    %c0_i32_0 = arith.constant 0 : i32
    %c0_i32_1 = arith.constant 0 : i32
    return %arg0, %c0_i32, %c0_i32_0 : i32, i32, i32
  }
  func.func @transform_10(%arg0: i32, %arg1: i32) -> (i32, i32, i32, i32) {
    %c0_i32 = arith.constant 0 : i32
    %c0_i32_0 = arith.constant 0 : i32
    %c0_i32_1 = arith.constant 0 : i32
    return %arg0, %arg1, %c0_i32, %c0_i32_0 : i32, i32, i32, i32
  }
}

</mosaic_0001>

<bundles_post_ra>
// kernel: tpu_custom_call.1
= control target key start
LH: loop header
LB: loop body
LE: loop exit
PB: predicated region body
PF: predicated region fallthrough
CT: control target
= control target key end

     0   :  { %s1985_s0 = inlined_call_operand.vmem [shape: f32[2,8,32], index: 0, kind: input, shape index: {}]   ;;  %s1986_s1 = inlined_call_operand.vmem [shape: f32[4,32,8], index: 1, kind: input, shape index: {}]   ;;  %s1987_s2 = inlined_call_operand.vmem [shape: f32[4,1,8], index: 2, kind: input, shape index: {}]   ;;  %s1988_s3 = inlined_call_operand.vmem [shape: f32[4,32,8], index: 3, kind: input, shape index: {}]   ;;  %s1989_s4 = inlined_call_operand.vmem [shape: f32[4,1,8], index: 4, kind: input, shape index: {}]   ;;  %s1990_s5 = inlined_call_operand.vmem [shape: f32[4,32,8], index: 5, kind: input, shape index: {}]   ;;  %s1991_s6 = inlined_call_operand.vmem [shape: f32[4,1,8], index: 6, kind: input, shape index: {}]   ;;  %s1992_s7 = inlined_call_operand.vmem [shape: f32[4,8,32], index: 7, kind: input, shape index: {}]   ;;  %s1993_s8 = inlined_call_operand.vmem [shape: f32[1,32], index: 8, kind: input, shape index: {}]   ;;  %s1994_s9 = inlined_call_operand.hbm [shape: f32[2,8,32], index: 9, kind: output, shape index: {0}]   ;;  %s1995_s10 = inlined_call_operand.hbm [shape: f32[2,4,8,8], index: 10, kind: output, shape index: {1}]  }
   0x1   :  { %2018 = sst [smem:[#allocation26_spill]] %s1985_s0 }
   0x2   :  { %2019 = sst [smem:[#allocation27_spill]] %s1986_s1 }
   0x3   :  { %2020 = sst [smem:[#allocation28_spill]] %s1994_s9 }
   0x4   :  { %2021 = sst [smem:[#allocation29_spill]] %s1995_s10 }
   0x5   :  { %16 = vsyncpa [#allocation4], 0 }
   0x6   :  { %18 = vsyncpa [#allocation4 + $0x1], 0 }
   0x7   :  { %19 = vsyncpa [#allocation6], 0 }
   0x8   :  { %21 = vsyncpa [#allocation6 + $0x1], 0  ;;  %s1666_s13 = smov 0   ;;  %s1668_s14 = smov 0  }
   0x9   :  { %s1670_s15 = smov 0   ;;  %s1672_s16 = smov 0  }
   0xa   :  { %s1674_s17 = smov 0   ;;  %s1676_s18 = smov 0  }
   0xb   :  { %s1678_s19 = smov 0   ;;  %s1680_s20 = smov 0  }
   0xc   :  { %s1682_s21 = smov 0   ;;  %s1684_s22 = smov 0  }
   0xd   :  { %s1686_s23 = smov 0  }
   0xe LB: > { %2022 = sst [smem:[#allocation9_spill]] %s1563_s13  ;;  %s1220_s24 = sadd.s32 4294967295, %s1603_s23   ;;  %s1603_s23 = sphi %s1686_s23, %s27_s23   ;;  %s1599_s22 = sphi %s1684_s22, %s2072_s22   ;;  %s1595_s21 = sphi %s1682_s21, %s2071_s21   ;;  %s1591_s20 = sphi %s1680_s20, %s2070_s20   ;;  %s1587_s19 = sphi %s1678_s19, %s2069_s19   ;;  %s1583_s18 = sphi %s1676_s18, %s2068_s18   ;;  %s1579_s17 = sphi %s1674_s17, %s2067_s17   ;;  %s1575_s16 = sphi %s1672_s16, %s2066_s16   ;;  %s1571_s15 = sphi %s1670_s15, %s2065_s15   ;;  %s1567_s14 = sphi %s1668_s14, %s2064_s14   ;;  %s1563_s13 = sphi %s1666_s13, %s2063_s13  }
   0xf   : > { %2023 = sst [smem:[#allocation10_spill]] %s1567_s14  ;;  %s1221_s25 = sadd.s32 4294967294, %s1603_s23  }
  0x10   : > { %2024 = sst [smem:[#allocation11_spill]] %s1571_s15  ;;  %s36_s26 = sadd.s32 1, %s1595_s21 }
  0x11   : > { %2025 = sst [smem:[#allocation12_spill]] %s1575_s16  ;;  %s39_s27 = sadd.s32 1, %s1599_s22 }
  0x12   : > { %2026 = sst [smem:[#allocation13_spill]] %s1579_s17  ;;  %p37_p0 = scmp.ge.s32.totalorder %s36_s26, 4 }
  0x13   : > { %2027 = sst [smem:[#allocation14_spill]] %s1583_s18  ;;  %s275_s28 = sadd.s32 1, %s1583_s18 }
  0x14   : > { %2028 = sst [smem:[#allocation15_spill]] %s1595_s21  ;;  %p285_p1 = scmp.ne.s32.totalorder %s1583_s18, %s1579_s17 }
  0x15   : > { %2029 = sst [smem:[#allocation16_spill]] %s1599_s22  ;;  %p1728_p2 = scmp.eq.s32.totalorder %s1220_s24, 7 }
  0x16   : > { %2030 = sst [smem:[#allocation17_spill]] %s1603_s23  ;;  %s2074_s26 = smov (%p37_p0, %s36_s26), 0 }
  0x17   : > { %2032 = sst [smem:[#allocation18_spill]] %s2074_s26  ;;  %s2076_s27 = smov (!%p37_p0, %s39_s27), %s1599_s22 }
  0x18   : > { %p1737_p3 = por %p1728_p2, %p285_p1  ;;  %p291_p4 = scmp.ne.s32.totalorder %s1579_s17, %s1575_s16 }
  0x19   : > { %p41_p5 = scmp.ge.s32.totalorder %s2076_s27, 2  ;;  %p1743_p6 = scmp.eq.s32.totalorder %s1221_s25, 7 }
  0x1a   : > { %s2033_s30 = scalar_select %p1737_p3, 1, 0 }
  0x1b   : > { %s299_s12 = ssub.s32 %s1595_s21, %s2074_s26  ;;  %s303_s24 = sadd.s32 1, %s1571_s15 }
  0x1c   : > { %2034 = sst [smem:[#allocation19_spill]] %s2033_s30  ;;  %s2078_s27 = smov (%p41_p5, %s2076_s27), 0 }
  0x1d   : > { %2036 = sst [smem:[#allocation20_spill]] %s2078_s27  ;;  %p1754_p7 = por %p1743_p6, %p291_p4 }
  0x1e   : > { %p313_p8 = scmp.ne.s32.totalorder %s1571_s15, %s1567_s14  ;;  %s272_s16 = ssub.s32 %s1599_s22, %s2078_s27 }
  0x1f   : > { %s2037_s10 = scalar_select %p1754_p7, 1, 0 }
  0x20   : > { %p319_p9 = scmp.ne.s32.totalorder %s1567_s14, %s1563_s13  ;;  %p273_p10 = scmp.eq.s32.totalorder %s272_s16, 0 }
  0x21   : > { %2038 = sst [smem:[#allocation21_spill]] %s2037_s10  ;;  %s300_s25 = sor.u32 %s299_s12, %s272_s16 }
  0x22   : > { %p301_p11 = scmp.eq.s32.totalorder %s300_s25, 0  ;;  %p1766_p12 = por %p313_p8, %p1728_p2 }
  0x23   : > { %s1771_s26 = scalar_select %p273_p10, %s1583_s18, %s275_s28  }
  0x24   : > { %s2039_s9 = scalar_select %p1766_p12, 1, 0 }
  0x25   : > { %2041 = sst [smem:[#allocation23_spill]] %s1771_s26  ;;  %p1778_p13 = por %p319_p9, %p1743_p6 }
  0x26   : > { %2040 = sst [smem:[#allocation22_spill]] %s2039_s9  ;;  %p1224_p0 = scmp.ge.s32.totalorder %s1603_s23, 1 }
  0x27   : > { %s1774_s21 = scalar_select %p301_p11, %s1571_s15, %s303_s24  }
  0x28   : > { %s2043_s30 = scalar_select %p1778_p13, 1, 0 }
  0x29   : > { %2042 = sst [smem:[#allocation24_spill]] %s1774_s21  ;;  %p397_p1 = scmp.lt.s32.totalorder %s1603_s23, 9 }
  0x2a   : > { %2044 = sst [smem:[#allocation25_spill]] %s2043_s30 }
  0x2b   : > { %p398_p4 = pnand %p1224_p0, %p397_p1 }
  0x2c   : > { %s2005_s16 = sand.u32 (!%p398_p4), 1, %s1579_s17   ;;  %s2006_s28 = sand.u32 (!%p398_p4), 1, %s1567_s14  }
  0x2d   : > { %401 = sbr.rel (%p398_p4) target bundleno = 1305 (0x519), region = 56  ;;  %s1788_s29 = sshll.u32 (!%p398_p4), %s2005_s16, 3 }
  0x2e   : > { %s1792_s11 = sshll.u32 (!%p398_p4), %s2006_s28, 3  ;;  %p467_p2 = scmp.lt.s32.totalorder (!%p398_p4), %s1591_s20, 1 }
  0x2f   : > { %p471_p5 = scmp.lt.s32.totalorder (!%p398_p4), %s1587_s19, 3  ;;  %s2045_s0 = sld [smem:[#allocation26_spill]] (!%p398_p4) }
  0x30   : > { %s2046_s1 = sld [smem:[#allocation27_spill]] (!%p398_p4)  ;;  %s459_s10 = scalar_lea.vmem (!%p398_p4), [#allocation3], %s1788_s29 }
  0x31   : > { %s466_s23 = scalar_lea.vmem (!%p398_p4), [#allocation5], %s1792_s11  ;;  %p1235_p6 = scmp.ne.s32.totalorder (!%p398_p4), %s1587_s19, 0 }
  0x34   : > { %s468_s12 = scalar_select %p467_p2, %s1591_s20, 1 }
  0x35   : > { %s1798_s24 = scalar_select %p471_p5, %s1587_s19, 3 }
  0x36   : > { %s1227_s25 = sshll.u32 %s468_s12, 3  ;;  %502 = sbr.rel (%p1235_p6) target bundleno = 61 (0x3d), region = 60  ;;  %vm503_vm0 = vcmask (!%p1235_p6), 261120   ;;  %v1605_v0 = vmov (!%p1235_p6), 0.0  }
  0x37   : > { %s1803_s16 = scalar_lea.vmem %s2045_s0, %s1227_s25  ;;  %s1255_s28 = sshll.u32 %s1798_s24, 5  ;;  %504 = vst.msk [vmem:[#allocation2] sm:$0xff] (!%p1235_p6), %vm503_vm0, %v1605_v0 }
  0x38   : > { %s1809_s21 = scalar_lea.vmem %s2046_s1, %s1255_s28  ;;  %s483_s9 = scalar_lea.vmem %s1988_s3, %s1255_s28 }
  0x39   : > { %s486_s22 = scalar_lea.vmem %s1989_s4, %s1798_s24  ;;  %s1825_s0 = scalar_lea.vmem %s1990_s5, %s1255_s28 }
  0x3a   : > { %s494_s1 = scalar_lea.vmem %s1991_s6, %s1798_s24  ;;  %s1234_s17 = sshll.u32 %s1798_s24, 3 }
  0x3b   : > { %s1835_s13 = scalar_lea.vmem %s1992_s7, %s1234_s17 }
  0x3d PF: > { %v591_v1 = vld [vmem:[%s483_s9] sm:$0xff]  ;;  %v592_v2 = vld [vmem:[%s483_s9 + $0x8] sm:$0xff]  ;;  %v1606_v4 = vmov 0.0|0.0   ;;  %v593_v7 = vld [vmem:[%s483_s9 + $0x10] sm:$0xff]  ;;  %vm1607_vm1 = vmmov 0   ;;  %v1608_v10 = vmov 0.0  }
  0x3e   : > { %v506_v3 = vld [vmem:[%s1809_s21] sm:$0xff]  ;;  %1333 = vmatprep.subr.bf16.mxu1 %v1606_v4  ;;  %v1334_v5 = vpack.c.bf16 %v592_v2, %v591_v1  ;;  %1327 = vmatprep.subr.bf16.mxu0 %v1606_v4  ;;  %v507_v6 = vld [vmem:[%s1809_s21 + $0x8] sm:$0xff]  ;;  %v594_v8 = vld [vmem:[%s483_s9 + $0x18] sm:$0xff]  ;;  %vm517_vm2 = vcmask 261120   ;;  %vm753_vm3 = vcmask 64512   ;;  %p1246_p8 = scmp.ne.s32.totalorder %s1587_s19, 3 }
  0x3f   : > { %v1328_v9 = vpack.c.bf16 %v507_v6, %v506_v3  ;;  %1298 = vmatprep.mubr.msk.f32.mxu1 %vm1607_vm1, %v1608_v10  ;;  %v508_v11 = vld [vmem:[%s1809_s21 + $0x10] sm:$0xff]  ;;  %v509_v12 = vld [vmem:[%s1809_s21 + $0x18] sm:$0xff]  ;;  %1287 = vmatprep.mubr.msk.f32.mxu0 %vm1607_vm1, %v1608_v10  ;;  %v1337_v13 = vpack.c.bf16 %v594_v8, %v593_v7  ;;  %v505_v15 = vld [vmem:[%s1803_s16] sm:$0xff]  ;;  %s2047_s16 = scalar_lea.vmem %s1987_s2, %s1798_s24 }
  0x40   : > { %1335 = vmatpush3.bf16.msra.mxu1 %v1334_v5  ;;  %v1331_v14 = vpack.c.bf16 %v509_v12, %v508_v11  ;;  %v1238_v16 = vld [vmem:[%s486_s22] ss:$0 sm:$0xff]  ;;  %v673_v25 = vld [vmem:[%s1825_s0 + $0x8] sm:$0xff]  ;;  %v674_v26 = vld [vmem:[%s1825_s0 + $0x10] sm:$0xff] }
  0x41   : > { %1329 = vmatpush3.bf16.msra.mxu0 %v1328_v9  ;;  %1336 = vmatprep.subr.bf16.mxu1 %v1606_v4  ;;  %v1236_v17 = vld [vmem:[%s2047_s16] ss:$0 sm:$0xff]  ;;  %v675_v28 = vld [vmem:[%s1825_s0 + $0x18] sm:$0xff] }
  0x42   : > { %1330 = vmatprep.subr.bf16.mxu0 %v1606_v4  ;;  %v672_v24 = vld [vmem:[%s1825_s0] sm:$0xff]  ;;  %v1343_v29 = vpack.c.bf16 %v675_v28, %v674_v26 }
  0x43   : > { %v1340_v27 = vpack.c.bf16 %v673_v25, %v672_v24  ;;  %v1240_v40 = vld [vmem:[%s494_s1] ss:$0 sm:$0xff] }
  0x44   : > { %1338 = vmatpush3.bf16.msra.mxu1 %v1337_v13  ;;  %v917_v43 = vld [vmem:[%s1835_s13] sm:$0xff] }
  0x45   : > { %1332 = vmatpush3.bf16.msra.mxu0 %v1331_v14  ;;  %1312 = vmatprep.subr.mxu1 %v1608_v10  ;;  %v916_v49 = vld [vmem:[#allocation2] sm:$0xff] }
  0x46   : > { %1339 = vmatprep.subr.bf16.mxu0 %v1606_v4  ;;  %v1247_v54 = vld [vmem:[%s1993_s8] ss:$0 sm:$0xff] (!%p1246_p8) }
  0x47   : > { %1299 = vmatmul.mubr.msk.f32.vlgmr.msra.gmra.mrb[0].mxu1 %vm517_vm2, %v505_v15 }
  0x48   : > { %1288 = vmatmul.mubr.msk.f32.vlgmr.msra.gmra.mrb[0].mxu0 %vm517_vm2, %v505_v15  ;;  %1314 = vmatprep.mubr.msk.f32.mxu1 %vm1607_vm1, %v1608_v10 }
  0x49   : > { %1309 = vmatprep.mubr.msk.f32.mxu0 %vm1607_vm1, %v1608_v10  ;;  %1341 = vmatpush3.bf16.msra.mxu0 %v1340_v27 }
  0x4a   : > { %1342 = vmatprep.subr.bf16.mxu0 %v1606_v4 }
  0x4d   : > { %1344 = vmatpush3.bf16.msra.mxu0 %v1343_v29 }
  0x4e   : > { %1322 = vmatprep.subr.mxu0 %v1608_v10 }
  0x50   : > { %1310 = vmatmul.mubr.msk.f32.vlgmr.msra.gmra.mrb[2].mxu0 %vm517_vm2, %v505_v15 }
  0x51   : > { %1324 = vmatprep.mubr.msk.f32.mxu0 %vm1607_vm1, %v1608_v10  ;;  %1323 = vmatpush3.msra.mxu0 %v917_v43 }
 0x11a   : > { %v668_v18 = vpop.f32.mrb[0].mxu1 }
 0x11b   : > { %v669_v19 = vadd.f32 %v1238_v16, %v668_v18  ;;  %v1300_v20 = vpop.f32.mrb[1].mxu1  ;;  %v587_v21 = vpop.f32.mrb[0].mxu0 }
 0x11c   : > { %v588_v22 = vadd.f32 %v1236_v17, %v587_v21  ;;  %v1289_v23 = vpop.f32.mrb[1].mxu0 }
 0x11d   : > { %1313 = vmatpush3.xpose.msk.msra.mxu1 %vm753_vm3, %v669_v19 }
 0x11e   : > { %1317 = vmatprep.subr.mxu1 %v1608_v10 }
 0x120   : > { %1315 = vmatmul.mubr.msk.f32.vlgmr.msra.gmra.mrb[2].mxu1 %vm753_vm3, %v588_v22 }
 0x121   : > { %1319 = vmatprep.mubr.msk.f32.mxu1 %vm1607_vm1, %v1608_v10 }
 0x123   : > { %v749_v39 = vpop.f32.mrb[2].mxu0 }
 0x124   : > { %v1311_v41 = vpop.f32.mrb[3].mxu0  ;;  %v750_v42 = vadd.f32 %v1240_v40, %v749_v39 }
 0x126   : > { %1318 = vmatpush3.msra.mxu1 %v750_v42 }
 0x1f3   : > { %v826_v30 = vpop.f32.mrb[2].mxu1 }
 0x1f4   : > { %v830_v31 = vmul.f32 0.35355338, %v826_v30  ;;  %v1316_v32 = vpop.f32.mrb[3].mxu1 }
 0x1f6   : > { %v831_v33 = vsel %vm753_vm3, %v830_v31, -inf }
 0x1f7   : > { %832 = vmax.xlane.f32.xlu0 %v831_v33 }
 0x284   : > { %v833_v34 = vpop.xlane.xlu0 %832 }
 0x285   : > { %v834_v35 = vsub.f32 %v830_v31, %v833_v34 }
 0x287   : > { %v835_v36 = vmul.f32 1.442695, %v834_v35 }
 0x289   : > { %1449 = vpow2.f32 %v835_v36 }
 0x293   : > { %v1450_v37 = vpop.eup %1449 }
 0x294   : > { %v837_v38 = vsel %vm753_vm3, %v1450_v37, 0.0 }
 0x295   : > { %838 = vadd.xlane.f32.xlu0 %v837_v38 }
 0x322   : > { %v839_v44 = vpop.xlane.xlu0 %838 }
 0x323   : > { %1451 = vrcp.f32 %v839_v44 }
 0x32d   : > { %v1452_v45 = vpop.eup %1451 }
 0x32e   : > { %v841_v46 = vmul.f32 %v1452_v45, %v1450_v37 }
 0x330   : > { %842 = vst.msk [vmem:[%s466_s23] sm:$0xff] %vm753_vm3, %v841_v46  ;;  %1320 = vmatmul.mubr.msk.f32.vlgmr.msra.gmra.mrb[4].mxu1 %vm753_vm3, %v841_v46 }
 0x403   : > { %v912_v47 = vpop.f32.mrb[4].mxu1 }
 0x404   : > { %v1321_v48 = vpop.f32.mrb[5].mxu1  ;;  %1325 = vmatmul.mubr.msk.f32.vlgmr.msra.gmra.mrb[4].mxu0 %vm753_vm3, %v912_v47 }
 0x4d4   : > { %996 = sbr.rel (%p1246_p8) target bundleno = 1253 (0x4e5), region = 64 }
 0x4d7   : > { %v987_v50 = vpop.f32.mrb[4].mxu0 }
 0x4d8   : > { %v991_v51 = vadd.f32 %v987_v50, %v916_v49  ;;  %v1326_v52 = vpop.f32.mrb[5].mxu0 }
 0x4da   : > { %992 = vst.msk [vmem:[#allocation2] sm:$0xff] %vm517_vm2, %v991_v51 }
 0x4e1   : > { %v997_v53 = vld [vmem:[#allocation2] sm:$0xff] }
 0x4e2   : > { %v1005_v55 = vadd.f32 %v1247_v54, %v997_v53 }
 0x4e4   : > { %1006 = vst.msk [vmem:[%s459_s10] sm:$0xff] %vm517_vm2, %v1005_v55 }
 0x4e5 PF: > { %s2048_s24 = sld [smem:[#allocation13_spill]]  ;;  %s1250_s22 = sshll.u32 %s1591_s20, 7 }
 0x4e6   : > { %s2050_s18 = sld [smem:[#allocation28_spill]]  ;;  %s1026_s30 = sshll.u32 %s459_s10, 4  ;;  %s1027_s30 = int_to_ptr.vmem [resolvable:$true] %s1026_s30 }
 0x4e7   : > { %s1453_s17 = scalar_lea.vmem %s1027_s30, 128  ;;  %s1609_s21 = smov [#allocation3]  }
 0x4e8   : > { %p1454_p9 = scmp.ne.s32.totalorder %s1027_s30, %s1453_s17  ;;  %s1457_s16 = sshll.u32 %s1609_s21, 4  ;;  %s1458_s16 = int_to_ptr.vmem [resolvable:$false] %s1457_s16 }
 0x4e9   : > { %s1459_s0 = scalar_lea.vmem %s1458_s16, 256  ;;  %p1460_p0 = scmp.lt.s32.totalorder %s1027_s30, %s1458_s16 }
 0x4ea   : > { %p1455_p10 = pnand %p1454_p9, %p1737_p3  ;;  %p1461_p1 = scmp.lt.s32.totalorder %s1459_s0, %s1453_s17 }
 0x4eb   : > { %s2052_s9 = sand.u32 1, %s2048_s24  }
 0x4ec   : > { %s2051_s26 = smov %s2050_s18  ;;  %s1895_s15 = scalar_lea.hbm %s2050_s18, %s1250_s22 }
 0x4ed   : > { %s1008_s14 = scalar_lea.sflag [#allocation4], %s2052_s9  ;;  %p1456_p11 = pneg %p1455_p10 }
 0x4ee   : > { %p1462_p4 = por %p1461_p1, %p1460_p0 }
 0x4f0   : > { %p1463_p2 = pnand %p1462_p4, %p1456_p11 }
 0x4f2   : > { %1466 = shalt.err (!%p1463_p2)
}
 0x4f3   : > { %s1467_s29 = scalar_lea.hbm %s1895_s15, 128  ;;  %s1471_s1 = scalar_lea.hbm %s2051_s26, 256 }
 0x4f4   : > { %p1468_p5 = scmp.ne.s32.totalorder %s1895_s15, %s1467_s29  ;;  %p1472_p9 = scmp.lt.u32.totalorder %s1895_s15, %s2051_s26 }
 0x4f5   : > { %p1473_p10 = scmp.lt.u32.totalorder %s1471_s1, %s1467_s29  ;;  %p1475_p0 = scmp.lt.u32.totalorder %s1467_s29, %s1895_s15 }
 0x4f6   : > { %p1469_p6 = pnand %p1468_p5, %p1737_p3 }
 0x4f7   : > { %p1474_p11 = por %p1473_p10, %p1472_p9 }
 0x4f8   : > { %p1470_p8 = pneg %p1469_p6 }
 0x4f9   : > { %p1476_p1 = por %p1475_p0, %p1474_p11 }
 0x4fb   : > { %p1477_p4 = pnand %p1476_p1, %p1470_p8 }
 0x4fd   : > { %1480 = shalt.err (!%p1477_p4)
}
 0x4fe   : > { %s2053_s22 = sld [smem:[#allocation10_spill]]  ;;  %s1251_s25 = sshll.u32 %s1591_s20, 2 }
 0x4ff   : > { %1345 = dma.vmem_to_hbm [thread:$0]  (%p1737_p3), %s1027_s30, 128, %s1895_s15, %s1008_s14  }
 0x500   : > { %s1041_s18 = sshll.u32 %s466_s23, 4  ;;  %s1037_s9 = sadd.s32 %s1587_s19, %s1251_s25  ;;  %s1922_s18 = int_to_ptr.vmem [resolvable:$true] %s1041_s18 }
 0x501   : > { %s1252_s17 = sshll.u32 %s1037_s9, 7  ;;  %s2055_s12 = sld [smem:[#allocation29_spill]] }
 0x502   : > { %s1481_s28 = scalar_lea.vmem %s1922_s18, 128  ;;  %s1610_s20 = smov [#allocation5]  }
 0x503   : > { %p1482_p2 = scmp.ne.s32.totalorder %s1922_s18, %s1481_s28  ;;  %s1485_s11 = sshll.u32 %s1610_s20, 4  ;;  %s1486_s11 = int_to_ptr.vmem [resolvable:$false] %s1485_s11 }
 0x504   : > { %s2056_s29 = sand.u32 1, %s2053_s22   ;;  %s1487_s19 = scalar_lea.vmem %s1486_s11, 256 }
 0x505   : > { %s1013_s10 = scalar_lea.sflag [#allocation6], %s2056_s29  ;;  %p1483_p3 = pnand %p1482_p2, %p1766_p12 }
 0x506   : > { %p1488_p6 = scmp.lt.s32.totalorder %s1922_s18, %s1486_s11  ;;  %p1489_p8 = scmp.lt.s32.totalorder %s1487_s19, %s1481_s28 }
 0x507   : > { %s1039_s0 = scalar_lea.hbm %s2055_s12, %s1252_s17  ;;  %p1484_p5 = pneg %p1483_p3 }
 0x508   : > { %p1490_p9 = por %p1489_p8, %p1488_p6 }
 0x50a   : > { %p1491_p10 = pnand %p1490_p9, %p1484_p5 }
 0x50c   : > { %1494 = shalt.err (!%p1491_p10)
}
 0x50d   : > { %s1495_s23 = scalar_lea.hbm %s1039_s0, 128  ;;  %s1499_s14 = scalar_lea.hbm %s2055_s12, 1024 }
 0x50e   : > { %p1496_p11 = scmp.ne.s32.totalorder %s1039_s0, %s1495_s23  ;;  %p1500_p4 = scmp.lt.u32.totalorder %s1039_s0, %s2055_s12 }
 0x50f   : > { %p1501_p2 = scmp.lt.u32.totalorder %s1499_s14, %s1495_s23  ;;  %p1503_p13 = scmp.lt.u32.totalorder %s1495_s23, %s1039_s0 }
 0x510   : > { %p1497_p0 = pnand %p1496_p11, %p1766_p12 }
 0x511   : > { %p1502_p3 = por %p1501_p2, %p1500_p4 }
 0x512   : > { %p1498_p1 = pneg %p1497_p0 }
 0x513   : > { %p1504_p6 = por %p1503_p13, %p1502_p3 }
 0x515   : > { %p1505_p5 = pnand %p1504_p6, %p1498_p1 }
 0x517   : > { %1508 = shalt.err (!%p1505_p5)
}
 0x518   : > { %1346 = dma.vmem_to_hbm [thread:$0]  (%p1766_p12), %s1922_s18, 128, %s1039_s0, %s1013_s10  }
 0x519 PF: > { %s2057_s24 = sld [smem:[#allocation17_spill]]  ;;  %s2058_s22 = sld [smem:[#allocation12_spill]] }
 0x51f   : > { %p1356_p8 = scmp.ge.s32.totalorder %s2057_s24, 2  ;;  %s1053_s9 = sand.u32 1, %s2058_s22  }
 0x520   : > { %s1054_s17 = scalar_lea.sflag [#allocation4], %s1053_s9 }
 0x521   : > { %p1350_p9 = pnand %p1356_p8, %p1754_p7 }
 0x523   : > { %1554 = dma.done.wait (!%p1350_p9), %s1054_s17, 128  }
 0x524   : > { %1556 = vsyncadd (!%p1350_p9), %s1054_s17, 4294967168  ;;  %s2060_s21 = sld [smem:[#allocation9_spill]]  ;;  %s2061_s16 = sld [smem:[#allocation25_spill]] }
 0x52a   : > { %s1062_s29 = sand.u32 1, %s2060_s21   ;;  %p2062_p13 = scmp.ne.s32.totalorder %s2061_s16, 0 }
 0x52b   : > { %s1063_s28 = scalar_lea.sflag [#allocation6], %s1062_s29 }
 0x52c   : > { %p1353_p10 = pnand %p1356_p8, %p2062_p13 }
 0x52e   : > { %1558 = dma.done.wait (!%p1353_p10), %s1063_s28, 128  }
 0x52f   : > { %1560 = vsyncadd (!%p1353_p10), %s1063_s28, 4294967168  ;;  %s27_s23 = sadd.s32 1, %s2057_s24   ;;  %s2063_s13 = sld [smem:[#allocation10_spill]] }
 0x530   : > { %p24_p12 = scmp.ge.s32.totalorder %s27_s23, 10   ;;  %s2064_s14 = sld [smem:[#allocation11_spill]] }
 0x531   : > { %s2065_s15 = sld [smem:[#allocation24_spill]]  ;;  %s2066_s16 = sld [smem:[#allocation13_spill]] }
 0x532   : > { %s2067_s17 = sld [smem:[#allocation14_spill]]  ;;  %s2068_s18 = sld [smem:[#allocation23_spill]] }
 0x533   : > { %s2069_s19 = sld [smem:[#allocation15_spill]]  ;;  %s2070_s20 = sld [smem:[#allocation16_spill]] }
 0x534   : > { %s2071_s21 = sld [smem:[#allocation18_spill]]  ;;  %s2072_s22 = sld [smem:[#allocation20_spill]] }
 0x535   :  { %26 = sbr.rel (!%p24_p12) target bundleno = 14 (0xe), region = 137 }
 0x53c   :  { %1068 = vsyncpa [#allocation4], 1 }
 0x53d   :  { %1070 = vsyncpa [#allocation4 + $0x1], 1 }
 0x53e   :  { %1071 = vsyncpa [#allocation6], 1 }
 0x53f   :  { %1073 = vsyncpa [#allocation6 + $0x1], 1 }

</bundles_post_ra>
